<compile_context>
chip_gen: v7x
topology: tpu7x:2x2x1
jax: 0.10.0
libtpu: 0.0.40
codegen_flags: <defaults>
</compile_context>

<pallas_src>
import functools

import jax
import jax.numpy as jnp
from jax.experimental import pallas as pl
from jax.experimental.pallas import tpu as pltpu


def _video_classifier_kernel(x_ref, wb_ref, wf_ref, bias_ref, out_ref, acc_ref,
                             *, bs, nf, feat_dim):
    k = pl.program_id(0)

    @pl.when(k == 0)
    def _():
        acc_ref[...] = jnp.zeros_like(acc_ref)

    # Partial-K contribution of the per-frame feature matmul:
    # (bs*nf, TK) bf16 @ (TK, 128) bf16 -> f32 accumulate.
    acc_ref[...] += jnp.dot(x_ref[...], wb_ref[...],
                            preferred_element_type=jnp.float32)

    @pl.when(k == pl.num_programs(0) - 1)
    def _():
        feat_sum = acc_ref[...]                                    # (bs*nf, 128) f32
        # Temporal pooling as a sublane reduction (XLU/VPU slot, not MXU).
        pooled_sum = jnp.sum(feat_sum.reshape(bs, nf, feat_dim), axis=1)  # (bs, 128)
        # fc head; 1/nf and both biases are pre-folded into wf/bias in the wrapper.
        logits = jnp.dot(pooled_sum, wf_ref[...],
                         preferred_element_type=jnp.float32)       # (bs, N_pad)
        out_ref[...] = (logits + bias_ref[...]).astype(out_ref.dtype)


def video_classifier(x, w_base, b_base, w_fc, b_fc, *, tk=512):
    """x: (bs, num_frames, C, H, W) float32."""
    bs, nf, c, h, w = x.shape
    d = c * h * w
    feat_dim = w_base.shape[1]
    num_classes = w_fc.shape[1]

    # ---------------- wrapper-side layout prep (plain JAX) ----------------
    # bf16 inputs for the dominant matmul; accumulation stays f32 in-kernel.
    x_flat = x.reshape(bs * nf, d).astype(jnp.bfloat16)
    wb = w_base.astype(jnp.bfloat16)

    # K tiling: pad D to a multiple of the tile (zero-padding is exact).
    d128 = ((d + 127) // 128) * 128
    tk_eff = min(tk, d128)
    n_k = pl.cdiv(d128, tk_eff)
    d_pad = n_k * tk_eff
    if d_pad != d:
        x_flat = jnp.pad(x_flat, ((0, 0), (0, d_pad - d)))
        wb = jnp.pad(wb, ((0, d_pad - d), (0, 0)))

    # Lane-dense output: pad num_classes up to a multiple of 128.
    n_pad = ((num_classes + 127) // 128) * 128
    w_fc_p = jnp.pad(w_fc.astype(jnp.float32),
                     ((0, 0), (0, n_pad - num_classes)))
    b_fc_p = jnp.pad(b_fc.astype(jnp.float32), (0, n_pad - num_classes))

    # Fold 1/nf into W_fc and both biases into one fused bias:
    #   mean_f(x_f @ Wb + b_base) @ Wfc + b_fc
    # = (sum_f x_f @ Wb) @ (Wfc/nf) + (b_base @ Wfc + b_fc)
    wf_scaled = w_fc_p * (1.0 / nf)                                  # (128, N_pad)
    fused_bias = (b_base.astype(jnp.float32) @ w_fc_p + b_fc_p)      # (N_pad,)
    fused_bias = fused_bias.reshape(1, n_pad)

    kern = functools.partial(_video_classifier_kernel,
                             bs=bs, nf=nf, feat_dim=feat_dim)

    out = pl.pallas_call(
        kern,
        out_shape=jax.ShapeDtypeStruct((bs, n_pad), jnp.float32),
        grid_spec=pltpu.PrefetchScalarGridSpec(
            num_scalar_prefetch=0,
            grid=(d_pad // tk_eff,),
            in_specs=[
                pl.BlockSpec((bs * nf, tk_eff), lambda k: (0, k)),   # x tile
                pl.BlockSpec((tk_eff, feat_dim), lambda k: (k, 0)),  # W_base tile
                pl.BlockSpec((feat_dim, n_pad), lambda k: (0, 0)),   # W_fc (scaled)
                pl.BlockSpec((1, n_pad), lambda k: (0, 0)),          # fused bias
            ],
            out_specs=pl.BlockSpec((bs, n_pad), lambda k: (0, 0)),
            scratch_shapes=[pltpu.VMEM((bs * nf, feat_dim), jnp.float32)],
        ),
        compiler_params=pltpu.CompilerParams(
            dimension_semantics=("arbitrary",),
            vmem_limit_bytes=32 * 1024 * 1024,
        ),
    )(x_flat, wb, wf_scaled, fused_bias)

    return out[:, :num_classes]


def reference(x, w_base, b_base, w_fc, b_fc):
    """Pure-JAX reference using the same bf16-cast inputs as the kernel."""
    bs, nf, c, h, w = x.shape
    x_flat = x.reshape(bs * nf, c * h * w).astype(jnp.bfloat16).astype(jnp.float32)
    wb = w_base.astype(jnp.bfloat16).astype(jnp.float32)
    feat = jnp.dot(x_flat, wb, precision=jax.lax.Precision.HIGHEST) + b_base
    feat = feat.reshape(bs, nf, -1).mean(axis=1)
    return jnp.dot(feat, w_fc, precision=jax.lax.Precision.HIGHEST) + b_fc


if __name__ == "__main__":
    # Small shapes consistent with the module's forward.
    bs, num_frames, C, H, W = 2, 8, 4, 16, 16
    feat_dim = 128          # `base` output dim, fixed by nn.Linear(128, num_classes)
    num_classes = 10

    key = jax.random.PRNGKey(0)
    k_x, k_wb, k_bb, k_wfc = jax.random.split(key, 4)

    x = jax.random.normal(k_x, (bs, num_frames, C, H, W), dtype=jnp.float32)

    # Deterministic stand-in `base` parameters (flatten -> Linear(C*H*W, 128)).
    w_base = jax.random.normal(k_wb, (C * H * W, feat_dim), dtype=jnp.float32) * 0.02
    b_base = jax.random.normal(k_bb, (feat_dim,), dtype=jnp.float32) * 0.02

    # fc: weight ~ N(0, 0.01), bias zero (as in the PyTorch __init__).
    w_fc = jax.random.normal(k_wfc, (feat_dim, num_classes), dtype=jnp.float32) * 0.01
    b_fc = jnp.zeros((num_classes,), dtype=jnp.float32)

    out = video_classifier(x, w_base, b_base, w_fc, b_fc)
    out = jax.block_until_ready(out)

    ref = reference(x, w_base, b_base, w_fc, b_fc)
    assert out.shape == (bs, num_classes)
    assert jnp.allclose(out, ref, atol=1e-3, rtol=1e-3), "mismatch vs JAX reference"

    print("KERNEL_OK")
</pallas_src>

<mosaic_0001>
module attributes {stable_mosaic.version = 11 : i64} {
  func.func @_video_classifier_kernel(%arg0: i32, %arg1: memref<16x512xbf16, #tpu.memory_space<vmem>>, %arg2: memref<512x128xbf16, #tpu.memory_space<vmem>>, %arg3: memref<128x128xf32, #tpu.memory_space<vmem>>, %arg4: memref<1x128xf32, #tpu.memory_space<vmem>>, %arg5: memref<2x128xf32, #tpu.memory_space<vmem>>, %arg6: memref<16x128xf32, #tpu.memory_space<vmem>>) attributes {dimension_semantics = [#tpu.dimension_semantics<arbitrary>], iteration_bounds = array<i64: 2>, scalar_prefetch = 0 : i64, scratch_operands = 1 : i64, tpu.core_type = #tpu.core_type<tc>, window_params = [{transform_indices = @transform_0, window_bounds = array<i64: 16, 512>}, {transform_indices = @transform_1, window_bounds = array<i64: 512, 128>}, {pipeline_mode = #tpu.pipeline_mode<synchronous>, transform_indices = @transform_2, window_bounds = array<i64: 128, 128>}, {pipeline_mode = #tpu.pipeline_mode<synchronous>, transform_indices = @transform_3, window_bounds = array<i64: 1, 128>}, {pipeline_mode = #tpu.pipeline_mode<synchronous>, transform_indices = @transform_4, window_bounds = array<i64: 2, 128>}]} {
    %c0_i32 = arith.constant 0 : i32
    %0 = arith.cmpi eq, %arg0, %c0_i32 : i32
    %1 = arith.extui %0 : i1 to i32
    %c0_i32_0 = arith.constant 0 : i32
    %2 = arith.cmpi ne, %1, %c0_i32_0 : i32
    scf.if %2 {
      %cst_9 = arith.constant 0.000000e+00 : f32
      %12 = vector.broadcast %cst_9 : f32 to vector<16x128xf32>
      %c0_10 = arith.constant 0 : index
      %c0_11 = arith.constant 0 : index
      %13 = vector.load %arg6[%c0_10, %c0_11] : memref<16x128xf32, #tpu.memory_space<vmem>>, vector<16x128xf32>
      tpu.vector_store %arg6[%c0_10, %c0_11], %12 {strides = array<i32>} : memref<16x128xf32, #tpu.memory_space<vmem>>, vector<16x128xf32>,
    } else {
    }
    %c0 = arith.constant 0 : index
    %c0_1 = arith.constant 0 : index
    %3 = vector.load %arg6[%c0, %c0_1] : memref<16x128xf32, #tpu.memory_space<vmem>>, vector<16x128xf32>
    %c0_2 = arith.constant 0 : index
    %c0_3 = arith.constant 0 : index
    %4 = vector.load %arg1[%c0_2, %c0_3] : memref<16x512xbf16, #tpu.memory_space<vmem>>, vector<16x512xbf16>
    %c0_4 = arith.constant 0 : index
    %c0_5 = arith.constant 0 : index
    %5 = vector.load %arg2[%c0_4, %c0_5] : memref<512x128xbf16, #tpu.memory_space<vmem>>, vector<512x128xbf16>
    %cst = arith.constant dense<0.000000e+00> : vector<16x128xf32>
    %6 = tpu.matmul %4, %5, %cst {dimension_numbers = #tpu.dot_dimension_numbers<[1], [0], [0], [1], [0, 0, 1, 1], [], []>} : vector<16x512xbf16>, vector<512x128xbf16>, vector<16x128xf32> -> vector<16x128xf32>
    %7 = arith.addf %3, %6 : vector<16x128xf32>
    %c0_6 = arith.constant 0 : index
    %c0_7 = arith.constant 0 : index
    %8 = vector.load %arg6[%c0_6, %c0_7] : memref<16x128xf32, #tpu.memory_space<vmem>>, vector<16x128xf32>
    tpu.vector_store %arg6[%c0_6, %c0_7], %7 {strides = array<i32>} : memref<16x128xf32, #tpu.memory_space<vmem>>, vector<16x128xf32>,
    %c1_i32 = arith.constant 1 : i32
    %9 = arith.cmpi eq, %arg0, %c1_i32 : i32
    %10 = arith.extui %9 : i1 to i32
    %c0_i32_8 = arith.constant 0 : i32
    %11 = arith.cmpi ne, %10, %c0_i32_8 : i32
    scf.if %11 {
      %c0_9 = arith.constant 0 : index
      %c0_10 = arith.constant 0 : index
      %12 = vector.load %arg6[%c0_9, %c0_10] : memref<16x128xf32, #tpu.memory_space<vmem>>, vector<16x128xf32>
      %13 = vector.shape_cast %12 : vector<16x128xf32> to vector<2x8x128xf32>
      %cst_11 = arith.constant dense<0.000000e+00> : vector<2x128xf32>
      %14 = vector.multi_reduction <add>, %13, %cst_11 [1] : vector<2x8x128xf32> to vector<2x128xf32>
      %c0_12 = arith.constant 0 : index
      %c0_13 = arith.constant 0 : index
      %15 = vector.load %arg3[%c0_12, %c0_13] : memref<128x128xf32, #tpu.memory_space<vmem>>, vector<128x128xf32>
      %cst_14 = arith.constant dense<0.000000e+00> : vector<2x128xf32>
      %16 = tpu.matmul %14, %15, %cst_14 {dimension_numbers = #tpu.dot_dimension_numbers<[1], [0], [0], [1], [0, 0, 1, 1], [], []>} : vector<2x128xf32>, vector<128x128xf32>, vector<2x128xf32> -> vector<2x128xf32>
      %c0_15 = arith.constant 0 : index
      %c0_16 = arith.constant 0 : index
      %17 = vector.load %arg4[%c0_15, %c0_16] : memref<1x128xf32, #tpu.memory_space<vmem>>, vector<1x128xf32>
      %18 = vector.broadcast %17 : vector<1x128xf32> to vector<2x128xf32>
      %19 = arith.addf %16, %18 : vector<2x128xf32>
      %c0_17 = arith.constant 0 : index
      %c0_18 = arith.constant 0 : index
      %20 = vector.load %arg5[%c0_17, %c0_18] : memref<2x128xf32, #tpu.memory_space<vmem>>, vector<2x128xf32>
      tpu.vector_store %arg5[%c0_17, %c0_18], %19 {strides = array<i32>} : memref<2x128xf32, #tpu.memory_space<vmem>>, vector<2x128xf32>,
    } else {
    }
    return
  }
  func.func @transform_0(%arg0: i32) -> (i32, i32) {
    %c0_i32 = arith.constant 0 : i32
    %c0_i32_0 = arith.constant 0 : i32
    return %c0_i32, %arg0 : i32, i32
  }
  func.func @transform_1(%arg0: i32) -> (i32, i32) {
    %c0_i32 = arith.constant 0 : i32
    %c0_i32_0 = arith.constant 0 : i32
    return %arg0, %c0_i32 : i32, i32
  }
  func.func @transform_2(%arg0: i32) -> (i32, i32) {
    %c0_i32 = arith.constant 0 : i32
    %c0_i32_0 = arith.constant 0 : i32
    %c0_i32_1 = arith.constant 0 : i32
    return %c0_i32, %c0_i32_0 : i32, i32
  }
  func.func @transform_3(%arg0: i32) -> (i32, i32) {
    %c0_i32 = arith.constant 0 : i32
    %c0_i32_0 = arith.constant 0 : i32
    %c0_i32_1 = arith.constant 0 : i32
    return %c0_i32, %c0_i32_0 : i32, i32
  }
  func.func @transform_4(%arg0: i32) -> (i32, i32) {
    %c0_i32 = arith.constant 0 : i32
    %c0_i32_0 = arith.constant 0 : i32
    %c0_i32_1 = arith.constant 0 : i32
    return %c0_i32, %c0_i32_0 : i32, i32
  }
}

</mosaic_0001>

<bundles_post_ra>
// kernel: tpu_custom_call.1
= control target key start
LH: loop header
LB: loop body
LE: loop exit
PB: predicated region body
PF: predicated region fallthrough
CT: control target
= control target key end

     0   :  { %9 = vsyncpa [#allocation4], 0  ;;  %s1590_s0 = inlined_call_operand.hbm [shape: bf16[16,1024], index: 0, kind: input, shape index: {}]   ;;  %s1591_s1 = inlined_call_operand.hbm [shape: bf16[1024,128], index: 1, kind: input, shape index: {}]   ;;  %s1592_s2 = inlined_call_operand.hbm [shape: f32[128,128], index: 2, kind: input, shape index: {}]   ;;  %s1593_s3 = inlined_call_operand.vmem [shape: f32[1,128], index: 3, kind: input, shape index: {}]   ;;  %s1594_s4 = inlined_call_operand.hbm [shape: f32[2,128], index: 4, kind: output, shape index: {}]  }
   0x1   :  { %11 = vsyncpa [#allocation4 + $0x1], 0 }
   0x2   :  { %12 = vsyncpa [#allocation7], 0 }
   0x3   :  { %14 = vsyncpa [#allocation7 + $0x1], 0 }
   0x4   :  { %15 = vsyncpa [#allocation5], 0  ;;  %s1333_s15 = smov 0   ;;  %s1335_s16 = smov 0  }
   0x5   :  { %s1337_s17 = smov 0   ;;  %s1339_s18 = smov 0  }
   0x6 LB: > { %s1352_s19 = sadd.s32 4294967295, %s1291_s18   ;;  %s1355_s20 = sadd.s32 1, %s1291_s18   ;;  %s1291_s18 = sphi %s1339_s18, %s1613_s18   ;;  %s1287_s17 = sphi %s1337_s17, %s1612_s17   ;;  %s1283_s16 = sphi %s1335_s16, %s1611_s16   ;;  %s1279_s15 = sphi %s1333_s15, %s1610_s15  }
   0x7   : > { %s25_s21 = ssub.s32 %s1291_s18, %s1355_s20  ;;  %s28_s22 = sadd.s32 1, %s1287_s17 }
   0x8   : > { %p26_p0 = scmp.eq.s32.totalorder %s25_s21, 0  ;;  %p35_p1 = scmp.ne.s32.totalorder %s1287_s17, %s1283_s16 }
   0x9   : > { %p36_p2 = scmp.eq.s32.totalorder %s1291_s18, 0  ;;  %p41_p3 = scmp.ne.s32.totalorder %s1283_s16, %s1279_s15 }
   0xa   : > { %s1365_s23 = scalar_select %p26_p0, %s1287_s17, %s28_s22  }
   0xb   : > { %p1367_p4 = por %p36_p2, %p35_p1  ;;  %p1595_p5 = scmp.eq.s32.totalorder %s1352_s19, 0 }
   0xc   : > { %p842_p6 = scmp.ge.s32.totalorder %s1291_s18, 1  ;;  %p141_p7 = scmp.lt.s32.totalorder %s1291_s18, 3 }
   0xd   : > { %p1376_p8 = por %p1595_p5, %p41_p3  ;;  %s1293_s27 = smov [#allocation8]  }
   0xe   : > { %p1381_p10 = pnand %p842_p6, %p141_p7  ;;  %s153_s28 = sshll.u32 %s1293_s27, 4  ;;  %s154_s28 = int_to_ptr.vmem [resolvable:$true] %s153_s28 }
   0xf   : > { %s1600_s25 = scalar_select %p1376_p8, 1, 0 }
  0x10   : > { %s1601_s26 = scalar_select %p1381_p10, 1, 0 }
  0x11   : > { %p1032_p11 = pneg %p1381_p10  ;;  %p1044_p13 = scmp.lt.s32.totalorder %s1291_s18, 2 }
  0x12   : > { %s1395_s30 = sand.u32 1, %s1287_s17   ;;  %s898_s5 = sshll.u32 %s1291_s18, 8 }
  0x13   : > { %p1389_p12 = pnand %p1032_p11, %p1595_p5  ;;  %p1400_p0 = pnand %p1044_p13, %p1367_p4 }
  0x14   : > { %s1131_s9 = scalar_lea.hbm %s1592_s2, 2048 }
  0x15   : > { %s1603_s6 = scalar_select %p1400_p0, 1, 0 }
  0x16   : > { %p1132_p1 = scmp.ne.s32.totalorder %s1592_s2, %s1131_s9  ;;  %p1133_p2 = pneg %p1389_p12 }
  0x17   : > { %p1138_p7 = scmp.lt.u32.totalorder %s1131_s9, %s1592_s2 }
  0x18   : > { %p1134_p3 = pnand %p1133_p2, %p1132_p1 }
  0x1a   : > { %p1135_p6 = pneg %p1134_p3 }
  0x1c   : > { %p1140_p4 = pnand %p1138_p7, %p1135_p6 }
  0x1e   : > { %1143 = shalt.err (!%p1140_p4)
}
  0x1f   : > { %s1144_s14 = scalar_lea.vmem %s154_s28, 2048  ;;  %p1152_p5 = scmp.lt.s32.totalorder %s154_s28, %s154_s28 }
  0x20   : > { %p1145_p11 = scmp.ne.s32.totalorder %s154_s28, %s1144_s14  ;;  %p1153_p8 = scmp.lt.s32.totalorder %s1144_s14, %s1144_s14 }
  0x22   : > { %p1147_p13 = pnand %p1145_p11, %p1133_p2  ;;  %p1154_p10 = por %p1153_p8, %p1152_p5 }
  0x24   : > { %p1148_p9 = pneg %p1147_p13 }
  0x26   : > { %p1155_p0 = pnand %p1154_p10, %p1148_p9 }
  0x28   : > { %1158 = shalt.err (!%p1155_p0)
}
  0x29   : > { %s1294_s15 = smov 128   ;;  %s1295_s21 = smov 8  }
  0x2a   : > { %1035 = dma.hbm_to_vmem [thread:$0]  (!%p1389_p12), %s1592_s2, 2048, %s154_s28, [#allocation7], %s1294_s15, %s1294_s15, %s1295_s21  }
  0x2b   : > { %s845_s27 = sshll.u32 %s1395_s30, 5  ;;  %s1424_s9 = scalar_lea.hbm %s1590_s0, %s898_s5 }
  0x2c   : > { %s174_s10 = scalar_lea.vmem [#allocation3], %s845_s27  ;;  %s171_s12 = scalar_lea.sflag [#allocation4], %s1395_s30 }
  0x2d   : > { %s181_s11 = sshll.u32 %s174_s10, 4  ;;  %s1159_s29 = scalar_lea.hbm %s1424_s9, 512  ;;  %s1426_s11 = int_to_ptr.vmem [resolvable:$true] %s181_s11 }
  0x2e   : > { %p1160_p5 = scmp.ne.s32.totalorder %s1424_s9, %s1159_s29  ;;  %p1604_p8 = scmp.ne.s32.totalorder %s1603_s6, 0 }
  0x2f   : > { %s1164_s13 = scalar_lea.hbm %s1590_s0, 1024  ;;  %p1165_p0 = scmp.lt.u32.totalorder %s1424_s9, %s1590_s0 }
  0x30   : > { %p1161_p9 = pneg %p1604_p8  ;;  %p1166_p1 = scmp.lt.u32.totalorder %s1164_s13, %s1159_s29 }
  0x31   : > { %p1168_p3 = scmp.lt.u32.totalorder %s1159_s29, %s1424_s9 }
  0x32   : > { %p1162_p10 = pnand %p1161_p9, %p1160_p5  ;;  %p1167_p2 = por %p1166_p1, %p1165_p0 }
  0x34   : > { %p1163_p12 = pneg %p1162_p10  ;;  %p1169_p6 = por %p1168_p3, %p1167_p2 }
  0x36   : > { %p1170_p7 = pnand %p1169_p6, %p1163_p12 }
  0x38   : > { %1173 = shalt.err (!%p1170_p7)
}
  0x39   : > { %s1174_s21 = scalar_lea.vmem %s1426_s11, 512  ;;  %s1296_s22 = smov [#allocation3]  }
  0x3a   : > { %p1175_p4 = scmp.ne.s32.totalorder %s1426_s11, %s1174_s21  ;;  %s1179_s24 = sshll.u32 %s1296_s22, 4  ;;  %s1180_s24 = int_to_ptr.vmem [resolvable:$false] %s1179_s24 }
  0x3b   : > { %s1181_s27 = scalar_lea.vmem %s1180_s24, 1024  ;;  %p1182_p5 = scmp.lt.s32.totalorder %s1426_s11, %s1180_s24 }
  0x3c   : > { %p1177_p11 = pnand %p1175_p4, %p1161_p9  ;;  %p1183_p10 = scmp.lt.s32.totalorder %s1181_s27, %s1174_s21 }
  0x3e   : > { %p1178_p13 = pneg %p1177_p11  ;;  %p1184_p0 = por %p1183_p10, %p1182_p5 }
  0x40   : > { %p1185_p1 = pnand %p1184_p0, %p1178_p13 }
  0x42   : > { %1188 = shalt.err (!%p1185_p1)
}
  0x43   : > { %s1297_s7 = smov 512   ;;  %s1298_s8 = smov 256  }
  0x44   : > { %s1299_s10 = smov 16   ;;  %s191_s29 = sand.u32 1, %s1291_s18  }
  0x45   : > { %1039 = dma.hbm_to_vmem [thread:$0]  (!%p1604_p8), %s1424_s9, 512, %s1426_s11, %s171_s12, %s1297_s7, %s1298_s8, %s1299_s10  }
  0x46   : > { %s848_s28 = sshll.u32 %s1395_s30, 8  ;;  %s899_s5 = sshll.u32 %s1291_s18, 12 }
  0x47   : > { %s195_s13 = scalar_lea.vmem [#allocation6], %s848_s28  ;;  %s1462_s22 = scalar_lea.hbm %s1591_s1, %s899_s5 }
  0x48   : > { %s202_s14 = sshll.u32 %s195_s13, 4  ;;  %s1466_s24 = scalar_lea.sflag [#allocation7], %s191_s29  ;;  %s1464_s14 = int_to_ptr.vmem [resolvable:$true] %s202_s14 }
  0x49   : > { %s1189_s27 = scalar_lea.hbm %s1462_s22, 4096  ;;  %s1194_s9 = scalar_lea.hbm %s1591_s1, 8192 }
  0x4a   : > { %p1190_p12 = scmp.ne.s32.totalorder %s1462_s22, %s1189_s27  ;;  %p1195_p6 = scmp.lt.u32.totalorder %s1462_s22, %s1591_s1 }
  0x4b   : > { %p1196_p7 = scmp.lt.u32.totalorder %s1194_s9, %s1189_s27  ;;  %p1198_p11 = scmp.lt.u32.totalorder %s1189_s27, %s1462_s22 }
  0x4c   : > { %p1192_p2 = pnand %p1190_p12, %p1161_p9 }
  0x4d   : > { %p1197_p4 = por %p1196_p7, %p1195_p6 }
  0x4e   : > { %p1193_p3 = pneg %p1192_p2 }
  0x4f   : > { %p1199_p13 = por %p1198_p11, %p1197_p4 }
  0x51   : > { %p1200_p5 = pnand %p1199_p13, %p1193_p3 }
  0x53   : > { %1203 = shalt.err (!%p1200_p5)
}
  0x54   : > { %s1204_s7 = scalar_lea.vmem %s1464_s14, 4096  ;;  %s1300_s8 = smov [#allocation6]  }
  0x55   : > { %p1205_p10 = scmp.ne.s32.totalorder %s1464_s14, %s1204_s7  ;;  %s1209_s10 = sshll.u32 %s1300_s8, 4  ;;  %s1210_s10 = int_to_ptr.vmem [resolvable:$false] %s1209_s10 }
  0x56   : > { %s1211_s29 = scalar_lea.vmem %s1210_s10, 8192  ;;  %p1212_p12 = scmp.lt.s32.totalorder %s1464_s14, %s1210_s10 }
  0x57   : > { %p1207_p0 = pnand %p1205_p10, %p1161_p9  ;;  %p1213_p2 = scmp.lt.s32.totalorder %s1211_s29, %s1204_s7 }
  0x59   : > { %p1208_p1 = pneg %p1207_p0  ;;  %p1214_p6 = por %p1213_p2, %p1212_p12 }
  0x5b   : > { %p1215_p7 = pnand %p1214_p6, %p1208_p1 }
  0x5d   : > { %1218 = shalt.err (!%p1215_p7)
}
  0x5e   : > { %s1301_s28 = smov 64   ;;  %s1302_s5 = smov 4  }
  0x5f   : > { %1042 = dma.hbm_to_vmem [thread:$0]  (!%p1604_p8), %s1462_s22, 4096, %s1464_s14, %s1466_s24, %s1301_s28, %s1301_s28, %s1302_s5  }
  0x60   : > { %p1605_p9 = scmp.ne.s32.totalorder %s1601_s26, 0 }
  0x61   : > { %s216_s13 = sand.u32 (!%p1605_p9), 1, %s1283_s16   ;;  %p1606_p3 = scmp.ne.s32.totalorder (!%p1605_p9), %s1600_s25, 0 }
  0x62   : > { %214 = sbr.rel (%p1605_p9) target bundleno = 638 (0x27e), region = 36  ;;  %s852_s15 = sshll.u32 (!%p1605_p9), %s216_s13, 5 }
  0x63   : > { %s217_s21 = scalar_lea.sflag (!%p1605_p9), [#allocation4], %s216_s13  ;;  %s1495_s27 = scalar_lea.vmem (!%p1605_p9), [#allocation3], %s852_s15 }
  0x69   : > { %1262 = dma.done.wait (%p1606_p3), %s217_s21, 512  }
  0x6a   : > { %1264 = vsyncadd (%p1606_p3), %s217_s21, 4294966784  ;;  %s225_s18 = sand.u32 1, %s1352_s19   ;;  %s853_s6 = sshll.u32 %s216_s13, 8 }
  0x6b   : > { %s226_s14 = scalar_lea.sflag [#allocation7], %s225_s18  ;;  %s1502_s22 = scalar_lea.vmem [#allocation6], %s853_s6 }
  0x6c   : > { %1266 = dma.done.wait (%p1606_p3), %s226_s14, 4096  }
  0x6d   : > { %1268 = vsyncadd (%p1606_p3), %s226_s14, 4294963200  ;;  %p1607_p8 = scmp.eq.s32.totalorder %s1352_s19, 0 }
  0x6f   : > { %1270 = dma.done.wait (%p1607_p8), [#allocation7], 2048   ;;  %p1608_p4 = pmov %p1607_p8 }
  0x70   : > { %p1609_p11 = scmp.ne.s32.totalorder %s1352_s19, 0 }
  0x71   : > { %1272 = vsyncadd (%p1608_p4), [#allocation7], 4294965248  ;;  %v1303_v0 = vmov (!%p1609_p11), 0.0  }
  0x72   : > { %264 = sbr.rel (%p1609_p11) target bundleno = 121 (0x79), region = 52  ;;  %265 = vst [vmem:[#allocation2] sm:$0xff] (!%p1609_p11), %v1303_v0  ;;  %266 = vst [vmem:[#allocation2 + $0x8] sm:$0xff] (!%p1609_p11), %v1303_v0 }
  0x79 PF: > { %v1093_v1 = vld [vmem:[%s1502_s22 + $0x40] sm:$0xff]   ;;  %v1097_v5 = vld [vmem:[%s1502_s22 + $0x48] sm:$0xff]   ;;  %v1101_v9 = vld [vmem:[%s1502_s22 + $0x50] sm:$0xff]   ;;  %p892_p13 = scmp.ne.s32.totalorder %s1352_s19, 1 }
  0x7a   : > { %v1094_v2 = vld [vmem:[%s1502_s22 + $0xc0] sm:$0xff]   ;;  %900 = vmatprep.subr.bf16.mxu0 %v1093_v1  ;;  %v1098_v6 = vld [vmem:[%s1502_s22 + $0xc8] sm:$0xff]   ;;  %v1102_v10 = vld [vmem:[%s1502_s22 + $0xd0] sm:$0xff]   ;;  %v1304_v58 = vmov (!%p892_p13), 0.0|0.0   ;;  %vm1305_vm0 = vmmov (!%p892_p13), 0   ;;  %v1306_v61 = vmov (!%p892_p13), 0.0  }
  0x7b   : > { %v1095_v3 = vld [vmem:[%s1502_s22] sm:$0xff]   ;;  %922 = vmatprep.subr.bf16.mxu1 %v1094_v2  ;;  %v1099_v7 = vld [vmem:[%s1502_s22 + $0x8] sm:$0xff]   ;;  %v1103_v11 = vld [vmem:[%s1502_s22 + $0x10] sm:$0xff]   ;;  %vm678_vm1 = vcmask (!%p892_p13), 1041409  }
  0x7c   : > { %v1096_v4 = vld [vmem:[%s1502_s22 + $0x80] sm:$0xff]   ;;  %901 = vmatpush3.bf16.msra.mxu0 %v1095_v3  ;;  %v1100_v8 = vld [vmem:[%s1502_s22 + $0x88] sm:$0xff]   ;;  %v1104_v12 = vld [vmem:[%s1502_s22 + $0x90] sm:$0xff]  }
  0x7d   : > { %923 = vmatpush3.bf16.msra.mxu1 %v1096_v4  ;;  %902 = vmatprep.subr.bf16.mxu0 %v1097_v5  ;;  %v1105_v13 = vld [vmem:[%s1502_s22 + $0x58] sm:$0xff]   ;;  %v1109_v17 = vld [vmem:[%s1502_s22 + $0x60] sm:$0xff]   ;;  %v1113_v21 = vld [vmem:[%s1502_s22 + $0x68] sm:$0xff]  }
  0x7e   : > { %924 = vmatprep.subr.bf16.mxu1 %v1098_v6  ;;  %v1106_v14 = vld [vmem:[%s1502_s22 + $0xd8] sm:$0xff]   ;;  %v1110_v18 = vld [vmem:[%s1502_s22 + $0xe0] sm:$0xff]   ;;  %v1114_v22 = vld [vmem:[%s1502_s22 + $0xe8] sm:$0xff]  }
  0x7f   : > { %v1107_v15 = vld [vmem:[%s1502_s22 + $0x18] sm:$0xff]   ;;  %v1111_v19 = vld [vmem:[%s1502_s22 + $0x20] sm:$0xff]   ;;  %v1115_v23 = vld [vmem:[%s1502_s22 + $0x28] sm:$0xff]  }
  0x80   : > { %903 = vmatpush3.bf16.msra.mxu0 %v1099_v7  ;;  %v1108_v16 = vld [vmem:[%s1502_s22 + $0x98] sm:$0xff]   ;;  %v1112_v20 = vld [vmem:[%s1502_s22 + $0xa0] sm:$0xff]   ;;  %v1116_v24 = vld [vmem:[%s1502_s22 + $0xa8] sm:$0xff]  }
  0x81   : > { %925 = vmatpush3.bf16.msra.mxu1 %v1100_v8  ;;  %904 = vmatprep.subr.bf16.mxu0 %v1101_v9  ;;  %v1117_v25 = vld [vmem:[%s1502_s22 + $0x70] sm:$0xff]   ;;  %v1121_v29 = vld [vmem:[%s1502_s22 + $0x78] sm:$0xff]   ;;  %v653_v55 = vld [vmem:[#allocation8] sm:$0xff] (!%p892_p13) }
  0x82   : > { %926 = vmatprep.subr.bf16.mxu1 %v1102_v10  ;;  %v1118_v26 = vld [vmem:[%s1502_s22 + $0xf0] sm:$0xff]   ;;  %v1122_v30 = vld [vmem:[%s1502_s22 + $0xf8] sm:$0xff]   ;;  %v654_v56 = vld [vmem:[#allocation8 + $0x8] sm:$0xff] (!%p892_p13) }
  0x83   : > { %v1119_v27 = vld [vmem:[%s1502_s22 + $0x30] sm:$0xff]   ;;  %v1123_v31 = vld [vmem:[%s1502_s22 + $0x38] sm:$0xff]   ;;  %v997_v59 = vpack.c.bf16 (!%p892_p13), %v654_v56, %v653_v55  ;;  %v657_v63 = vld [vmem:[#allocation8 + $0x20] sm:$0xff] (!%p892_p13) }
  0x84   : > { %905 = vmatpush3.bf16.msra.mxu0 %v1103_v11  ;;  %v1120_v28 = vld [vmem:[%s1502_s22 + $0xb0] sm:$0xff]   ;;  %v1124_v32 = vld [vmem:[%s1502_s22 + $0xb8] sm:$0xff]   ;;  %v658_v0 = vld [vmem:[#allocation8 + $0x28] sm:$0xff] (!%p892_p13) }
  0x85   : > { %927 = vmatpush3.bf16.msra.mxu1 %v1104_v12  ;;  %906 = vmatprep.subr.bf16.mxu0 %v1105_v13  ;;  %v1125_v33 = vld [vmem:[%s1495_s27] ss:$16 sps:$4 sm:$0xff]   ;;  %v1127_v34 = vld [vmem:[%s1495_s27 + $0x4] ss:$16 sps:$4 sm:$0xff]   ;;  %v1128_v35 = vld [vmem:[%s1495_s27 + $0x8] ss:$16 sps:$4 sm:$0xff]   ;;  %v1003_v3 = vpack.c.bf16 (!%p892_p13), %v658_v0, %v657_v63 }
  0x86   : > { %928 = vmatprep.subr.bf16.mxu1 %v1106_v14  ;;  %v1130_v36 = vld [vmem:[%s1495_s27 + $0xc] ss:$16 sps:$4 sm:$0xff]   ;;  %581 = vmatprep.mubr.bf16.mxu0 %v1127_v34  ;;  %v267_v46 = vld [vmem:[#allocation2] sm:$0xff]  ;;  %v661_v11 = vld [vmem:[#allocation8 + $0x40] sm:$0xff] (!%p892_p13) }
  0x87   : > { %622 = vmatprep.mubr.bf16.mxu1 %v1130_v36  ;;  %v268_v51 = vld [vmem:[#allocation2 + $0x8] sm:$0xff]  ;;  %v655_v57 = vld [vmem:[#allocation8 + $0x10] sm:$0xff] (!%p892_p13)  ;;  %v662_v12 = vld [vmem:[#allocation8 + $0x48] sm:$0xff] (!%p892_p13) }
  0x88   : > { %907 = vmatpush3.bf16.msra.mxu0 %v1107_v15  ;;  %v656_v60 = vld [vmem:[#allocation8 + $0x18] sm:$0xff] (!%p892_p13)  ;;  %v659_v6 = vld [vmem:[#allocation8 + $0x30] sm:$0xff] (!%p892_p13)  ;;  %v1009_v13 = vpack.c.bf16 (!%p892_p13), %v662_v12, %v661_v11 }
  0x89   : > { %929 = vmatpush3.bf16.msra.mxu1 %v1108_v16  ;;  %908 = vmatprep.subr.bf16.mxu0 %v1109_v17  ;;  %v1000_v62 = vpack.c.bf16 (!%p892_p13), %v656_v60, %v655_v57  ;;  %v660_v7 = vld [vmem:[#allocation8 + $0x38] sm:$0xff] (!%p892_p13)  ;;  %v663_v16 = vld [vmem:[#allocation8 + $0x50] sm:$0xff] (!%p892_p13) }
  0x8a   : > { %930 = vmatprep.subr.bf16.mxu1 %v1110_v18  ;;  %v1006_v8 = vpack.c.bf16 (!%p892_p13), %v660_v7, %v659_v6  ;;  %v664_v17 = vld [vmem:[#allocation8 + $0x58] sm:$0xff] (!%p892_p13) }
  0x8b   : > { %v1012_v18 = vpack.c.bf16 (!%p892_p13), %v664_v17, %v663_v16 }
  0x8c   : > { %909 = vmatpush3.bf16.msra.mxu0 %v1111_v19 }
  0x8d   : > { %931 = vmatpush3.bf16.msra.mxu1 %v1112_v20  ;;  %910 = vmatprep.subr.bf16.mxu0 %v1113_v21  ;;  %v665_v21 = vld [vmem:[#allocation8 + $0x60] sm:$0xff] (!%p892_p13) }
  0x8e   : > { %932 = vmatprep.subr.bf16.mxu1 %v1114_v22  ;;  %v666_v22 = vld [vmem:[#allocation8 + $0x68] sm:$0xff] (!%p892_p13) }
  0x90   : > { %911 = vmatpush3.bf16.msra.mxu0 %v1115_v23  ;;  %v1015_v23 = vpack.c.bf16 (!%p892_p13), %v666_v22, %v665_v21 }
  0x91   : > { %933 = vmatpush3.bf16.msra.mxu1 %v1116_v24  ;;  %912 = vmatprep.subr.bf16.mxu0 %v1117_v25 }
  0x92   : > { %934 = vmatprep.subr.bf16.mxu1 %v1118_v26  ;;  %v667_v26 = vld [vmem:[#allocation8 + $0x70] sm:$0xff] (!%p892_p13) }
  0x94   : > { %913 = vmatpush3.bf16.msra.mxu0 %v1119_v27  ;;  %v668_v27 = vld [vmem:[#allocation8 + $0x78] sm:$0xff] (!%p892_p13) }
  0x95   : > { %935 = vmatpush3.bf16.msra.mxu1 %v1120_v28  ;;  %914 = vmatprep.subr.bf16.mxu0 %v1121_v29  ;;  %v1018_v28 = vpack.c.bf16 (!%p892_p13), %v668_v27, %v667_v26 }
  0x96   : > { %936 = vmatprep.subr.bf16.mxu1 %v1122_v30 }
  0x98   : > { %915 = vmatpush3.bf16.msra.mxu0 %v1123_v31 }
  0x99   : > { %937 = vmatpush3.bf16.msra.mxu1 %v1124_v32  ;;  %996 = vmatprep.subr.bf16.mxu0 (!%p892_p13), %v1304_v58  ;;  %v893_v32 = vld [vmem:[%s1593_s3] ss:$0 sm:$0xff] (!%p892_p13) }
  0x9b   : > { %582 = vmatmul.mubr.bf16.vlgmr.msra.gmra.mrb[0].mxu0 %v1125_v33 }
  0x9c   : > { %623 = vmatmul.mubr.bf16.vlgmr.msra.gmra.mrb[0].mxu1 %v1128_v35  ;;  %993 = vmatprep.mubr.msk.f32.mxu0 (!%p892_p13), %vm1305_vm0, %v1306_v61 }
  0x9d   : > { %998 = vmatpush3.bf16.msra.mxu0 (!%p892_p13), %v997_v59 }
  0x9e   : > { %999 = vmatprep.subr.bf16.mxu0 (!%p892_p13), %v1304_v58 }
  0xa1   : > { %1001 = vmatpush3.bf16.msra.mxu0 (!%p892_p13), %v1000_v62 }
  0xa2   : > { %1002 = vmatprep.subr.bf16.mxu0 (!%p892_p13), %v1304_v58 }
  0xa5   : > { %1004 = vmatpush3.bf16.msra.mxu0 (!%p892_p13), %v1003_v3 }
  0xa6   : > { %1005 = vmatprep.subr.bf16.mxu0 (!%p892_p13), %v1304_v58 }
  0xa9   : > { %1007 = vmatpush3.bf16.msra.mxu0 (!%p892_p13), %v1006_v8 }
  0xaa   : > { %1008 = vmatprep.subr.bf16.mxu0 (!%p892_p13), %v1304_v58 }
  0xad   : > { %1010 = vmatpush3.bf16.msra.mxu0 (!%p892_p13), %v1009_v13 }
  0xae   : > { %1011 = vmatprep.subr.bf16.mxu0 (!%p892_p13), %v1304_v58 }
  0xb1   : > { %1013 = vmatpush3.bf16.msra.mxu0 (!%p892_p13), %v1012_v18 }
  0xb2   : > { %1014 = vmatprep.subr.bf16.mxu0 (!%p892_p13), %v1304_v58 }
  0xb5   : > { %1016 = vmatpush3.bf16.msra.mxu0 (!%p892_p13), %v1015_v23 }
  0xb6   : > { %1017 = vmatprep.subr.bf16.mxu0 (!%p892_p13), %v1304_v58 }
  0xb9   : > { %1019 = vmatpush3.bf16.msra.mxu0 (!%p892_p13), %v1018_v28 }
 0x16e   : > { %v916_v37 = vpop.f32.mrb[0].mxu0 }
 0x16f   : > { %v938_v38 = vpop.f32.mrb[0].mxu1  ;;  %v917_v39 = vpop.f32.mrb[1].mxu0 }
 0x170   : > { %v918_v40 = vadd.f32 %v917_v39, %v916_v37  ;;  %v939_v41 = vpop.f32.mrb[1].mxu1  ;;  %v919_v42 = vpop.f32.mrb[2].mxu0 }
 0x171   : > { %v940_v43 = vadd.f32 %v939_v41, %v938_v38  ;;  %v941_v44 = vpop.f32.mrb[2].mxu1  ;;  %v920_v45 = vpop.f32.mrb[3].mxu0 }
 0x172   : > { %v921_v47 = vadd.f32 %v920_v45, %v919_v42  ;;  %v942_v48 = vpop.f32.mrb[3].mxu1 }
 0x173   : > { %v625_v49 = vadd.f32 %v940_v43, %v918_v40  ;;  %v943_v50 = vadd.f32 %v942_v48, %v941_v44  ;;  %638 = sbr.rel (%p892_p13) target bundleno = 613 (0x265), region = 56 }
 0x175   : > { %v631_v52 = vadd.f32 %v625_v49, %v267_v46  ;;  %v628_v53 = vadd.f32 %v943_v50, %v921_v47 }
 0x177   : > { %633 = vst [vmem:[#allocation2] sm:$0xff] %v631_v52  ;;  %v632_v54 = vadd.f32 %v628_v53, %v268_v51 }
 0x179   : > { %634 = vst [vmem:[#allocation2 + $0x8] sm:$0xff] %v632_v54 }
 0x17e   : > { %v639_v1 = vld [vmem:[#allocation2] sm:$0xff] }
 0x17f   : > { %v641_v4 = vrot.slane %v639_v1, 4 }
 0x180   : > { %v640_v2 = vld [vmem:[#allocation2 + $0x8] sm:$0xff] }
 0x181   : > { %v647_v5 = vrot.slane %v640_v2, 4  ;;  %v642_v9 = vadd.f32 %v641_v4, %v639_v1 }
 0x183   : > { %v648_v10 = vadd.f32 %v647_v5, %v640_v2  ;;  %v643_v14 = vrot.slane %v642_v9, 2 }
 0x185   : > { %v649_v15 = vrot.slane %v648_v10, 2  ;;  %v644_v19 = vadd.f32 %v643_v14, %v642_v9 }
 0x187   : > { %v650_v20 = vadd.f32 %v649_v15, %v648_v10  ;;  %v645_v24 = vrot.slane %v644_v19, 1 }
 0x189   : > { %v651_v25 = vrot.slane %v650_v20, 1  ;;  %v646_v29 = vadd.f32 %v645_v24, %v644_v19 }
 0x18b   : > { %v652_v30 = vadd.f32 %v651_v25, %v650_v20 }
 0x18d   : > { %v679_v31 = vsel %vm678_vm1, %v652_v30, %v646_v29 }
 0x18e   : > { %994 = vmatmul.mubr.f32.vlgmr.msra.gmra.mrb[0].mxu0 %v679_v31 }
 0x261   : > { %v747_v33 = vpop.f32.mrb[0].mxu0 }
 0x262   : > { %v748_v34 = vadd.f32 %v893_v32, %v747_v33  ;;  %v995_v35 = vpop.f32.mrb[1].mxu0 }
 0x264   : > { %751 = vst [vmem:[#allocation9] sm:$0x3] %v748_v34 }
 0x265 PF: > { %p1046_p5 = scmp.eq.s32.totalorder %s1352_s19, 1  ;;  %s1307_s24 = smov [#allocation9]  }
 0x266   : > { %s759_s30 = sshll.u32 %s1307_s24, 4  ;;  %s760_s30 = int_to_ptr.vmem [resolvable:$true] %s759_s30 }
 0x267   : > { %s1219_s9 = scalar_lea.vmem %s760_s30, 32  ;;  %p1226_p12 = scmp.lt.s32.totalorder %s760_s30, %s760_s30 }
 0x268   : > { %p1220_p10 = scmp.ne.s32.totalorder %s760_s30, %s1219_s9  ;;  %p1227_p2 = scmp.lt.s32.totalorder %s1219_s9, %s1219_s9 }
 0x26a   : > { %p1221_p0 = pnand %p1220_p10, %p1046_p5  ;;  %p1228_p6 = por %p1227_p2, %p1226_p12 }
 0x26c   : > { %p1222_p1 = pneg %p1221_p0 }
 0x26e   : > { %p1229_p7 = pnand %p1228_p6, %p1222_p1 }
 0x270   : > { %1232 = shalt.err (!%p1229_p7)
}
 0x271   : > { %s1233_s7 = scalar_lea.hbm %s1594_s4, 32 }
 0x272   : > { %p1234_p9 = scmp.ne.s32.totalorder %s1594_s4, %s1233_s7  ;;  %p1239_p4 = scmp.lt.u32.totalorder %s1233_s7, %s1594_s4 }
 0x274   : > { %p1235_p3 = pnand %p1234_p9, %p1046_p5 }
 0x276   : > { %p1236_p8 = pneg %p1235_p3 }
 0x278   : > { %p1241_p11 = pnand %p1239_p4, %p1236_p8 }
 0x27a   : > { %1244 = shalt.err (!%p1241_p11)
}
 0x27b   : > { %1029 = dma.vmem_to_hbm [thread:$0]  (%p1046_p5), %s760_s30, 32, %s1594_s4, [#allocation5]  }
 0x27c   : > { %1274 = dma.done.wait (%p1046_p5), [#allocation5], 32  }
 0x27d   : > { %1276 = vsyncadd (%p1046_p5), [#allocation5], 4294967264 }
 0x27e PF: > { %p18_p13 = scmp.ge.s32.totalorder %s1355_s20, 4   ;;  %s1610_s15 = smov %s1283_s16 }
 0x27f   : > { %s1611_s16 = smov %s1287_s17  ;;  %s1612_s17 = smov %s1365_s23 }
 0x280   : > { %s1613_s18 = smov %s1355_s20  ;;  %20 = sbr.rel (!%p18_p13) target bundleno = 6 (0x6), region = 98 }
 0x287   :  { %772 = vsyncpa [#allocation4], 1 }
 0x288   :  { %774 = vsyncpa [#allocation4 + $0x1], 1 }
 0x289   :  { %775 = vsyncpa [#allocation7], 1 }
 0x28a   :  { %777 = vsyncpa [#allocation7 + $0x1], 1 }
 0x28b   :  { %778 = vsyncpa [#allocation5], 1 }
 0x28c   :  { %780 = vsyncpa [#allocation5 + $0x1], 1 }

</bundles_post_ra>
